<compile_context>
chip_gen: v7x
topology: tpu7x:2x2x1
jax: 0.10.0
libtpu: 0.0.40
codegen_flags: <defaults>
</compile_context>

<pallas_src>
import jax
import jax.numpy as jnp
from jax import lax
from jax.experimental import pallas as pl
from jax.experimental.pallas import tpu as pltpu


def mlp_kernel(x_ref, w1_ref, b1_ref, w2_ref, b2_ref, w3_ref, b3_ref, o_ref):
    x = x_ref[...]                                          # (TB, 8) batch-major
    # Layer 1: contract x's last axis (trans-B dot) -> feature-major (20, TB).
    h1 = lax.dot_general(w1_ref[...], x, (((1,), (1,)), ((), ())),
                         preferred_element_type=jnp.float32)
    h1 = jnp.maximum(h1 + b1_ref[...], 0.0)
    # Layer 2: (20, 20) @ (20, TB) -> (20, TB)
    h2 = jnp.dot(w2_ref[...], h1.astype(w2_ref.dtype),
                 preferred_element_type=jnp.float32)
    h2 = jnp.maximum(h2 + b2_ref[...], 0.0)
    # Output layer: (2, 20) @ (20, TB) -> (2, TB), lane-dense store.
    out = jnp.dot(w3_ref[...], h2.astype(w3_ref.dtype),
                  preferred_element_type=jnp.float32)
    o_ref[...] = (out + b3_ref[...]).astype(o_ref.dtype)


def _pick_batch_tile(B, batch_tile):
    """Lane-dense batch tile; >=4 grid steps for large B (v7x megacore)."""
    batch_tile = max(128, (int(batch_tile) // 128) * 128)
    tb = min(batch_tile, ((pl.cdiv(B, 4) + 127) // 128) * 128)
    if tb >= B:
        tb = B          # single full-extent block (always layout-legal)
    return tb


def ann_model_forward(x, params, *, batch_tile=32768,
                      compute_dtype=jnp.bfloat16,
                      feature_major_output=False):
    """Fused MLP forward.

    x:      (B, in_features) f32, batch-major (same as the PyTorch input).
    params: dict of PyTorch-layout weights w{1,2,3} (out, in) and biases
            b{1,2,3} (out, 1), all f32.
    Returns (B, out_features) f32 by default (PyTorch parity), or the
    transpose-free feature-major (out_features, B) if feature_major_output.
    """
    w1, b1 = params["w1"], params["b1"]
    w2, b2 = params["w2"], params["b2"]
    w3, b3 = params["w3"], params["b3"]

    B, in_features = x.shape
    hidden1 = w1.shape[0]
    hidden2 = w2.shape[0]
    out_features = w3.shape[0]

    # Matmul operands in compute_dtype (f32 accumulation inside the kernel);
    # biases stay f32.  Under jit the x cast fuses with its producer.
    xc = x.astype(compute_dtype)
    w1c, w2c, w3c = (w.astype(compute_dtype) for w in (w1, w2, w3))

    tb = _pick_batch_tile(B, batch_tile)
    grid = (pl.cdiv(B, tb),)

    def const_spec(shape):
        return pl.BlockSpec(shape, lambda i: (0, 0))

    item = jnp.dtype(compute_dtype).itemsize
    flops = 2 * B * (in_features * hidden1 + hidden1 * hidden2
                     + hidden2 * out_features)
    bytes_accessed = int(B * in_features * item + B * out_features * 4
                         + (w1.size + w2.size + w3.size) * item
                         + (b1.size + b2.size + b3.size) * 4)

    out_fm = pl.pallas_call(
        mlp_kernel,
        out_shape=jax.ShapeDtypeStruct((out_features, B), jnp.float32),
        grid=grid,
        in_specs=[
            # x tile, batch-major straight from HBM (no wrapper transpose).
            # If xprof shows exposed DMA, add pipeline_mode=pl.Buffered(3).
            pl.BlockSpec((tb, in_features), lambda i: (i, 0)),
            const_spec((hidden1, in_features)),   # w1 (VMEM-resident)
            const_spec((hidden1, 1)),             # b1
            const_spec((hidden2, hidden1)),       # w2
            const_spec((hidden2, 1)),             # b2
            const_spec((out_features, hidden2)),  # w3
            const_spec((out_features, 1)),        # b3
        ],
        out_specs=pl.BlockSpec((out_features, tb), lambda i: (0, i)),
        compiler_params=pltpu.CompilerParams(
            dimension_semantics=("parallel",),
            vmem_limit_bytes=48 * 1024 * 1024),
        cost_estimate=pl.CostEstimate(
            flops=flops, transcendentals=0, bytes_accessed=bytes_accessed),
    )(xc, w1c, b1, w2c, b2, w3c, b3)

    if feature_major_output:
        return out_fm            # (out_features, B): transpose-free path
    # (B, out_features) for PyTorch shape parity (tiny (2, B) transpose only).
    return out_fm.T


def init_params(key, input_features=8, hidden1=20, hidden2=20, out_features=2):
    """Deterministic init mimicking PyTorch nn.Linear defaults.

    Weights stored in PyTorch (out, in) form; biases as (out, 1)."""
    ks = jax.random.split(key, 6)

    def linear(kw, kb, fan_in, fan_out):
        bound = 1.0 / jnp.sqrt(jnp.float32(fan_in))
        w = jax.random.uniform(kw, (fan_out, fan_in), jnp.float32, -bound, bound)
        b = jax.random.uniform(kb, (fan_out, 1), jnp.float32, -bound, bound)
        return w, b

    w1, b1 = linear(ks[0], ks[1], input_features, hidden1)
    w2, b2 = linear(ks[2], ks[3], hidden1, hidden2)
    w3, b3 = linear(ks[4], ks[5], hidden2, out_features)
    return {"w1": w1, "b1": b1, "w2": w2, "b2": b2, "w3": w3, "b3": b3}


def reference_forward(x, params):
    """Plain-JAX reference (standard batch-major layout) for correctness."""
    h1 = jnp.maximum(x @ params["w1"].T + params["b1"][:, 0], 0.0)
    h2 = jnp.maximum(h1 @ params["w2"].T + params["b2"][:, 0], 0.0)
    return h2 @ params["w3"].T + params["b3"][:, 0]


if __name__ == "__main__":
    key = jax.random.PRNGKey(0)
    k_x, k_x2, k_p = jax.random.split(key, 3)

    input_features = 8
    params = init_params(k_p, input_features=input_features,
                         hidden1=20, hidden2=20, out_features=2)

    fwd = jax.jit(ann_model_forward,
                  static_argnames=("batch_tile", "compute_dtype",
                                   "feature_major_output"))

    # Small shape consistent with the module spec (batch=8, features=8).
    batch = 8
    x = jax.random.normal(k_x, (batch, input_features), dtype=jnp.float32)
    ref = reference_forward(x, params)

    # f32-operand path: tight correctness check.
    out_f32 = jax.block_until_ready(fwd(x, params, compute_dtype=jnp.float32))
    assert out_f32.shape == (batch, 2), out_f32.shape
    assert jnp.allclose(out_f32, ref, atol=1e-4, rtol=1e-5), "f32 mismatch (B=8)"

    # Default bf16-operand path (f32 accumulation): looser tolerance.
    out_bf16 = jax.block_until_ready(fwd(x, params))
    assert out_bf16.shape == (batch, 2), out_bf16.shape
    assert jnp.allclose(out_bf16, ref, atol=5e-2, rtol=5e-2), "bf16 mismatch (B=8)"

    # Multi-tile grid + partial last tile + transpose-free feature-major output.
    batch2 = 200
    x2 = jax.random.normal(k_x2, (batch2, input_features), dtype=jnp.float32)
    out2 = jax.block_until_ready(
        fwd(x2, params, batch_tile=128, feature_major_output=True))
    ref2 = reference_forward(x2, params)
    assert out2.shape == (2, batch2), out2.shape
    assert jnp.allclose(out2.T, ref2, atol=5e-2, rtol=5e-2), "mismatch (B=200)"

    print("KERNEL_OK")
</pallas_src>

<mosaic_0001>
module attributes {stable_mosaic.version = 11 : i64} {
  func.func @mlp_kernel(%arg0: i32, %arg1: memref<8x8xf32, #tpu.memory_space<vmem>>, %arg2: memref<20x8xf32, #tpu.memory_space<vmem>>, %arg3: memref<20x1xf32, #tpu.memory_space<vmem>>, %arg4: memref<20x20xf32, #tpu.memory_space<vmem>>, %arg5: memref<20x1xf32, #tpu.memory_space<vmem>>, %arg6: memref<2x20xf32, #tpu.memory_space<vmem>>, %arg7: memref<2x1xf32, #tpu.memory_space<vmem>>, %arg8: memref<2x8xf32, #tpu.memory_space<vmem>>) attributes {dimension_semantics = [#tpu.dimension_semantics<parallel>], iteration_bounds = array<i64: 1>, scalar_prefetch = 0 : i64, scratch_operands = 0 : i64, tpu.core_type = #tpu.core_type<tc>, window_params = [{transform_indices = @transform_0, window_bounds = array<i64: 8, 8>}, {pipeline_mode = #tpu.pipeline_mode<synchronous>, transform_indices = @transform_1, window_bounds = array<i64: 20, 8>}, {pipeline_mode = #tpu.pipeline_mode<synchronous>, transform_indices = @transform_2, window_bounds = array<i64: 20, 1>}, {pipeline_mode = #tpu.pipeline_mode<synchronous>, transform_indices = @transform_3, window_bounds = array<i64: 20, 20>}, {pipeline_mode = #tpu.pipeline_mode<synchronous>, transform_indices = @transform_4, window_bounds = array<i64: 20, 1>}, {pipeline_mode = #tpu.pipeline_mode<synchronous>, transform_indices = @transform_5, window_bounds = array<i64: 2, 20>}, {pipeline_mode = #tpu.pipeline_mode<synchronous>, transform_indices = @transform_6, window_bounds = array<i64: 2, 1>}, {transform_indices = @transform_7, window_bounds = array<i64: 2, 8>}]} {
    %c0 = arith.constant 0 : index
    %c0_0 = arith.constant 0 : index
    %0 = vector.load %arg1[%c0, %c0_0] : memref<8x8xf32, #tpu.memory_space<vmem>>, vector<8x8xf32>
    %c0_1 = arith.constant 0 : index
    %c0_2 = arith.constant 0 : index
    %1 = vector.load %arg2[%c0_1, %c0_2] : memref<20x8xf32, #tpu.memory_space<vmem>>, vector<20x8xf32>
    %cst = arith.constant dense<0.000000e+00> : vector<20x8xf32>
    %2 = tpu.matmul %1, %0, %cst {dimension_numbers = #tpu.dot_dimension_numbers<[1], [1], [0], [0], [0, 0, 1, 0], [], []>} : vector<20x8xf32>, vector<8x8xf32>, vector<20x8xf32> -> vector<20x8xf32>
    %c0_3 = arith.constant 0 : index
    %c0_4 = arith.constant 0 : index
    %3 = vector.load %arg3[%c0_3, %c0_4] : memref<20x1xf32, #tpu.memory_space<vmem>>, vector<20x1xf32>
    %4 = vector.broadcast %3 : vector<20x1xf32> to vector<20x8xf32>
    %5 = arith.addf %2, %4 : vector<20x8xf32>
    %cst_5 = arith.constant 0.000000e+00 : f32
    %6 = vector.broadcast %cst_5 : f32 to vector<20x8xf32>
    %7 = arith.maximumf %5, %6 : vector<20x8xf32>
    %c0_6 = arith.constant 0 : index
    %c0_7 = arith.constant 0 : index
    %8 = vector.load %arg4[%c0_6, %c0_7] : memref<20x20xf32, #tpu.memory_space<vmem>>, vector<20x20xf32>
    %cst_8 = arith.constant dense<0.000000e+00> : vector<20x8xf32>
    %9 = tpu.matmul %8, %7, %cst_8 {dimension_numbers = #tpu.dot_dimension_numbers<[1], [0], [0], [1], [0, 0, 1, 1], [], []>} : vector<20x20xf32>, vector<20x8xf32>, vector<20x8xf32> -> vector<20x8xf32>
    %c0_9 = arith.constant 0 : index
    %c0_10 = arith.constant 0 : index
    %10 = vector.load %arg5[%c0_9, %c0_10] : memref<20x1xf32, #tpu.memory_space<vmem>>, vector<20x1xf32>
    %11 = vector.broadcast %10 : vector<20x1xf32> to vector<20x8xf32>
    %12 = arith.addf %9, %11 : vector<20x8xf32>
    %cst_11 = arith.constant 0.000000e+00 : f32
    %13 = vector.broadcast %cst_11 : f32 to vector<20x8xf32>
    %14 = arith.maximumf %12, %13 : vector<20x8xf32>
    %c0_12 = arith.constant 0 : index
    %c0_13 = arith.constant 0 : index
    %15 = vector.load %arg6[%c0_12, %c0_13] : memref<2x20xf32, #tpu.memory_space<vmem>>, vector<2x20xf32>
    %cst_14 = arith.constant dense<0.000000e+00> : vector<2x8xf32>
    %16 = tpu.matmul %15, %14, %cst_14 {dimension_numbers = #tpu.dot_dimension_numbers<[1], [0], [0], [1], [0, 0, 1, 1], [], []>} : vector<2x20xf32>, vector<20x8xf32>, vector<2x8xf32> -> vector<2x8xf32>
    %c0_15 = arith.constant 0 : index
    %c0_16 = arith.constant 0 : index
    %17 = vector.load %arg7[%c0_15, %c0_16] : memref<2x1xf32, #tpu.memory_space<vmem>>, vector<2x1xf32>
    %18 = vector.broadcast %17 : vector<2x1xf32> to vector<2x8xf32>
    %19 = arith.addf %16, %18 : vector<2x8xf32>
    %c0_17 = arith.constant 0 : index
    %c0_18 = arith.constant 0 : index
    %20 = vector.load %arg8[%c0_17, %c0_18] : memref<2x8xf32, #tpu.memory_space<vmem>>, vector<2x8xf32>
    tpu.vector_store %arg8[%c0_17, %c0_18], %19 {strides = array<i32>} : memref<2x8xf32, #tpu.memory_space<vmem>>, vector<2x8xf32>,
    return
  }
  func.func @transform_0(%arg0: i32) -> (i32, i32) {
    %c0_i32 = arith.constant 0 : i32
    %c0_i32_0 = arith.constant 0 : i32
    return %arg0, %c0_i32 : i32, i32
  }
  func.func @transform_1(%arg0: i32) -> (i32, i32) {
    %c0_i32 = arith.constant 0 : i32
    %c0_i32_0 = arith.constant 0 : i32
    %c0_i32_1 = arith.constant 0 : i32
    return %c0_i32, %c0_i32_0 : i32, i32
  }
  func.func @transform_2(%arg0: i32) -> (i32, i32) {
    %c0_i32 = arith.constant 0 : i32
    %c0_i32_0 = arith.constant 0 : i32
    %c0_i32_1 = arith.constant 0 : i32
    return %c0_i32, %c0_i32_0 : i32, i32
  }
  func.func @transform_3(%arg0: i32) -> (i32, i32) {
    %c0_i32 = arith.constant 0 : i32
    %c0_i32_0 = arith.constant 0 : i32
    %c0_i32_1 = arith.constant 0 : i32
    return %c0_i32, %c0_i32_0 : i32, i32
  }
  func.func @transform_4(%arg0: i32) -> (i32, i32) {
    %c0_i32 = arith.constant 0 : i32
    %c0_i32_0 = arith.constant 0 : i32
    %c0_i32_1 = arith.constant 0 : i32
    return %c0_i32, %c0_i32_0 : i32, i32
  }
  func.func @transform_5(%arg0: i32) -> (i32, i32) {
    %c0_i32 = arith.constant 0 : i32
    %c0_i32_0 = arith.constant 0 : i32
    %c0_i32_1 = arith.constant 0 : i32
    return %c0_i32, %c0_i32_0 : i32, i32
  }
  func.func @transform_6(%arg0: i32) -> (i32, i32) {
    %c0_i32 = arith.constant 0 : i32
    %c0_i32_0 = arith.constant 0 : i32
    %c0_i32_1 = arith.constant 0 : i32
    return %c0_i32, %c0_i32_0 : i32, i32
  }
  func.func @transform_7(%arg0: i32) -> (i32, i32) {
    %c0_i32 = arith.constant 0 : i32
    %c0_i32_0 = arith.constant 0 : i32
    return %c0_i32, %arg0 : i32, i32
  }
}

</mosaic_0001>

<bundles_post_ra>
// kernel: ann_model_forward.1
= control target key start
LH: loop header
LB: loop body
LE: loop exit
PB: predicated region body
PF: predicated region fallthrough
CT: control target
= control target key end

     0   :  { %vm49_vm0 = vcmask 64512   ;;  %v458_v1 = vmov 0.0   ;;  %vm459_vm1 = vmmov 0   ;;  %v460_v4 = vmov 0   ;;  %s587_s0 = inlined_call_operand.vmem [shape: f32[8,8], index: 0, kind: input, shape index: {}]   ;;  %s588_s1 = inlined_call_operand.vmem [shape: f32[20,8], index: 1, kind: input, shape index: {}]   ;;  %s589_s2 = inlined_call_operand.vmem [shape: f32[20,1], index: 2, kind: input, shape index: {}]   ;;  %s590_s3 = inlined_call_operand.vmem [shape: f32[20,20], index: 3, kind: input, shape index: {}]   ;;  %s591_s4 = inlined_call_operand.vmem [shape: f32[20,1], index: 4, kind: input, shape index: {}]   ;;  %s592_s5 = inlined_call_operand.vmem [shape: f32[2,20], index: 5, kind: input, shape index: {}]   ;;  %s593_s6 = inlined_call_operand.vmem [shape: f32[2,1], index: 6, kind: input, shape index: {}]   ;;  %s594_s7 = inlined_call_operand.hbm [shape: f32[2,8], index: 7, kind: output, shape index: {}]  }
   0x1   :  { %v27_v0 = vld [vmem:[%s587_s0] sm:$0xff]  ;;  %386 = vmatprep.subr.mxu0 %v458_v1  ;;  %388 = vmatprep.mubr.msk.f32.mxu0 %vm459_vm1, %v458_v1  ;;  %v33_v5 = vld [vmem:[%s589_s2 + $0x10] sm:$0xf] }
   0x2   :  { %v31_v2 = vld [vmem:[%s589_s2] sm:$0xff]  ;;  %387 = vmatpush3.xpose.msk.msra.mxu0 %vm49_vm0, %v27_v0  ;;  %432 = vset.pattern.permute.xlu0 %v460_v4 }
   0x3   :  { %v28_v3 = vld [vmem:[%s588_s1] sm:$0xff]  ;;  %36 = vperm.xlu0 %432, %v31_v2   ;;  %433 = vset.pattern.permute.xlu1 %v460_v4 }
   0x4   :  { %12 = vsyncpa [#allocation3], 0  ;;  %v32_v6 = vld [vmem:[%s589_s2 + $0x8] sm:$0xff]  ;;  %46 = vperm.xlu1 %433, %v33_v5   ;;  %403 = vmatprep.mubr.msk.f32.mxu1 %vm459_vm1, %v458_v1  ;;  %v148_v7 = vld [vmem:[%s591_s4] sm:$0xff]  ;;  %v461_v13 = vmov 0.0|0.0   ;;  %vm176_vm2 = vcmask 1043456  }
   0x5   :  { %389 = vmatmul.mubr.msk.f32.vlgmr.msra.gmra.mrb[0].mxu0 %vm49_vm0, %v28_v3  ;;  %v29_v8 = vld [vmem:[%s588_s1 + $0x8] sm:$0xff]  ;;  %v150_v10 = vld [vmem:[%s591_s4 + $0x10] sm:$0xf]  ;;  %v264_v12 = vld [vmem:[%s593_s6] sm:$0x3]  ;;  %421 = vmatprep.subr.bf16.mxu1 %v461_v13  ;;  %vm166_vm3 = vcmask 162816  }
   0x6   :  { %391 = vmatprep.mubr.msk.f32.mxu0 %vm459_vm1, %v458_v1  ;;  %v149_v9 = vld [vmem:[%s591_s4 + $0x8] sm:$0xff]  ;;  %v30_v11 = vld [vmem:[%s588_s1 + $0x10] sm:$0xf]  ;;  %424 = vmatprep.subr.bf16.mxu0 %v461_v13  ;;  %v145_v30 = vld [vmem:[%s590_s3] sm:$0xff]  ;;  %s462_s25 = smov [#allocation2]   ;;  %vm346_vm4 = vcmask 58368  }
   0x7   :  { %41 = vperm.xlu0 %432, %v32_v6   ;;  %v146_v31 = vld [vmem:[%s590_s3 + $0x8] sm:$0xff]  ;;  %v147_v32 = vld [vmem:[%s590_s3 + $0x10] sm:$0xf]  ;;  %v263_v49 = vld [vmem:[%s592_s5] sm:$0x3]  ;;  %s354_s26 = sshll.u32 %s462_s25, 4  ;;  %s355_s26 = int_to_ptr.vmem [resolvable:$true] %s354_s26 }
   0x8   :  { %153 = vperm.xlu1 %433, %v148_v7   ;;  %s434_s27 = scalar_lea.vmem %s355_s26, 32  ;;  %p439_p1 = scmp.lt.s32.totalorder %s355_s26, %s355_s26 }
   0x9   :  { %392 = vmatmul.mubr.msk.f32.gmra.mrb[2].mxu0 %vm49_vm0, %v29_v8  ;;  %p435_p0 = scmp.ne.s32.totalorder %s355_s26, %s434_s27  ;;  %p440_p2 = scmp.lt.s32.totalorder %s434_s27, %s434_s27 }
   0xa   :  { %394 = vmatprep.mubr.msk.f32.mxu0 %vm459_vm1, %v458_v1 }
   0xb   :  { %158 = vperm.xlu0 %432, %v149_v9   ;;  %p441_p3 = por %p440_p2, %p439_p1 }
   0xc   :  { %163 = vperm.xlu1 %433, %v150_v10  }
   0xd   :  { %395 = vmatmul.mubr.msk.f32.gmra.mrb[4].mxu0 %vm49_vm0, %v30_v11  ;;  %p442_p4 = pnand %p441_p3, %p435_p0 }
   0xe   :  { %418 = vmatprep.mubr.msk.f32.mxu0 %vm459_vm1, %v458_v1 }
   0xf   :  { %267 = vperm.xlu0 %432, %v264_v12  }
  0x82   :  { %v37_v14 = vpop.permute.xlu0 %36 }
  0x83   :  { %v47_v24 = vpop.permute.xlu1 %46 }
  0x86   :  { %v42_v18 = vpop.permute.xlu0 %41 }
  0x87   :  { %v154_v35 = vpop.permute.xlu1 %153 }
  0x8a   :  { %v159_v37 = vpop.permute.xlu0 %158 }
  0x8b   :  { %v164_v43 = vpop.permute.xlu1 %163 }
  0x8e   :  { %v268_v50 = vpop.permute.xlu0 %267 }
  0xd8   :  { %v128_v15 = vpop.f32.mrb[0].mxu0 }
  0xd9   :  { %v390_v16 = vpop.f32.mrb[1].mxu0  ;;  %v129_v17 = vadd.f32 %v128_v15, %v37_v14 }
  0xdb   :  { %v142_v22 = vmax.f32 %v129_v17, 0.0 }
  0xdc   :  { %v133_v19 = vpop.f32.mrb[2].mxu0 }
  0xdd   :  { %v134_v20 = vadd.f32 %v133_v19, %v42_v18  ;;  %v393_v21 = vpop.f32.mrb[3].mxu0 }
  0xdf   :  { %v143_v23 = vmax.f32 %v134_v20, 0.0 }
  0xe0   :  { %v138_v25 = vpop.f32.mrb[4].mxu0 }
  0xe1   :  { %v139_v26 = vadd.f32 %v138_v25, %v47_v24  ;;  %v396_v27 = vpop.f32.mrb[5].mxu0  ;;  %v422_v28 = vpack.c.bf16 %v143_v23, %v142_v22 }
  0xe3   :  { %v144_v29 = vmax.f32 %v139_v26, 0.0  ;;  %423 = vmatpush3.bf16.msra.mxu1 %v422_v28 }
  0xe4   :  { %401 = vmatprep.subr.mxu1 %v458_v1 }
  0xe7   :  { %402 = vmatpush3.msk.msra.mxu1 %vm176_vm2, %v144_v29 }
  0xe8   :  { %404 = vmatmul.mubr.msk.f32.vlgmr.msra.gmra.mrb[0].mxu1 %vm166_vm3, %v145_v30 }
  0xe9   :  { %406 = vmatprep.mubr.msk.f32.mxu1 %vm459_vm1, %v458_v1 }
  0xec   :  { %407 = vmatmul.mubr.msk.f32.gmra.mrb[2].mxu1 %vm166_vm3, %v146_v31 }
  0xed   :  { %409 = vmatprep.mubr.msk.f32.mxu1 %vm459_vm1, %v458_v1 }
  0xf0   :  { %410 = vmatmul.mubr.msk.f32.gmra.mrb[4].mxu1 %vm166_vm3, %v147_v32 }
 0x1bb   :  { %v246_v33 = vpop.f32.mrb[0].mxu1 }
 0x1bc   :  { %v405_v34 = vpop.f32.mrb[1].mxu1  ;;  %v247_v36 = vadd.f32 %v246_v33, %v154_v35 }
 0x1be   :  { %v260_v41 = vmax.f32 %v247_v36, 0.0 }
 0x1bf   :  { %v251_v38 = vpop.f32.mrb[2].mxu1 }
 0x1c0   :  { %v252_v39 = vadd.f32 %v251_v38, %v159_v37  ;;  %v408_v40 = vpop.f32.mrb[3].mxu1 }
 0x1c2   :  { %v261_v42 = vmax.f32 %v252_v39, 0.0 }
 0x1c3   :  { %v256_v44 = vpop.f32.mrb[4].mxu1 }
 0x1c4   :  { %v425_v45 = vpack.c.bf16 %v261_v42, %v260_v41  ;;  %v257_v46 = vadd.f32 %v256_v44, %v164_v43  ;;  %v411_v47 = vpop.f32.mrb[5].mxu1 }
 0x1c6   :  { %426 = vmatpush3.bf16.msra.mxu0 %v425_v45  ;;  %v262_v48 = vmax.f32 %v257_v46, 0.0 }
 0x1c7   :  { %416 = vmatprep.subr.mxu0 %v458_v1 }
 0x1ca   :  { %417 = vmatpush3.msk.msra.mxu0 %vm176_vm2, %v262_v48 }
 0x1cb   :  { %419 = vmatmul.mubr.msk.f32.vlgmr.msra.gmra.mrb[6].mxu0 %vm166_vm3, %v263_v49 }
 0x29e   :  { %v342_v51 = vpop.f32.mrb[6].mxu0 }
 0x29f   :  { %v343_v52 = vadd.f32 %v342_v51, %v268_v50  ;;  %v420_v53 = vpop.f32.mrb[7].mxu0 }
 0x2a1   :  { %347 = vst.msk [vmem:[#allocation2] sm:$0x3] %vm346_vm4, %v343_v52 }
 0x2a2   :  { %445 = shalt.err (!%p442_p4)
}
 0x2a3   :  { %s446_s29 = scalar_lea.hbm %s594_s7, 32 }
 0x2a4   :  { %p447_p5 = scmp.ne.s32.totalorder %s594_s7, %s446_s29  ;;  %p450_p6 = scmp.lt.u32.totalorder %s446_s29, %s594_s7 }
 0x2a6   :  { %p452_p7 = pnand %p450_p6, %p447_p5 }
 0x2a8   :  { %455 = shalt.err (!%p452_p7)
}
 0x2a9   :  { %357 = dma.vmem_to_hbm [thread:$0]  %s355_s26, 32, %s594_s7, [#allocation3]  }
 0x2aa   :  { %456 = dma.done.wait [#allocation3], 32  }
 0x2ab   :  { %457 = vsyncadd [#allocation3], 4294967264 }
 0x2ac   :  { %361 = vsyncpa [#allocation3], 1 }

</bundles_post_ra>
